<compile_context>
chip_gen: v7x
topology: tpu7x:2x2x1
jax: 0.10.0
libtpu: 0.0.40
codegen_flags: <defaults>
</compile_context>

<pallas_src>
import functools

import jax
import jax.numpy as jnp
from jax import lax
from jax.experimental import pallas as pl
from jax.experimental.pallas import tpu as pltpu


def _make_mlm_kernel(chunk_c, c_total):
    """Per-row masked-LM NLL with online softmax over vocab chunks."""
    ragged = (c_total % chunk_c) != 0

    def kernel(logits_ref, labels_ref, loss_ref, m_sc, l_sc, t_sc):
        j = pl.program_id(1)  # vocab-chunk index (innermost, "arbitrary")

        @pl.when(j == 0)
        def _init():
            m_sc[...] = jnp.full_like(m_sc, -jnp.inf)
            l_sc[...] = jnp.zeros_like(l_sc)
            t_sc[...] = jnp.zeros_like(t_sc)

        logits = logits_ref[...].astype(jnp.float32)   # (TM, CHUNK)
        labels = labels_ref[...]                       # (TM, 1) int32
        tm, ck = logits.shape

        # Global column index of each lane in this chunk.
        col = j * ck + lax.broadcasted_iota(jnp.int32, (tm, ck), 1)
        if ragged:
            # Out-of-bounds lanes of the last (partial) chunk must not enter the
            # softmax: mask to -inf (statically skipped when vocab divides).
            logits = jnp.where(col < c_total, logits, jnp.float32(-jnp.inf))

        # Target-logit contribution from this chunk (at most one lane matches;
        # ignore_index=-1 and masked columns never match).
        t_sc[...] += jnp.sum(jnp.where(col == labels, logits, 0.0),
                             axis=-1, keepdims=True)

        # Online logsumexp update.
        m_new = jnp.maximum(m_sc[...], jnp.max(logits, axis=-1, keepdims=True))
        alpha = jnp.exp(m_sc[...] - m_new)
        l_sc[...] = alpha * l_sc[...] + jnp.sum(jnp.exp(logits - m_new),
                                                axis=-1, keepdims=True)
        m_sc[...] = m_new

        @pl.when(j == pl.num_programs(1) - 1)
        def _finalize():
            lse = m_sc[...] + jnp.log(l_sc[...])
            valid = labels != -1
            loss_ref[...] = jnp.where(valid, lse - t_sc[...], 0.0)

    return kernel


def _choose_tile_rows(n, max_tile_rows):
    """Largest divisor of n that is a multiple of 8 and <= max_tile_rows."""
    for t in range(min(n, max_tile_rows), 7, -1):
        if t % 8 == 0 and n % t == 0:
            return t
    return None


def _mlm_per_row_loss(logits, labels, max_tile_rows=256, max_chunk_cols=4096):
    """Per-row NLL (ignore_index=-1 rows -> 0.0) for an (N, C) logits slab."""
    n, c = logits.shape
    labels2 = labels.reshape(n, 1).astype(jnp.int32)

    max_tile_rows = max(8, (int(max_tile_rows) // 8) * 8)
    max_chunk_cols = max(128, (int(max_chunk_cols) // 128) * 128)

    # ---- vocab chunking (lane axis) ----
    if c > max_chunk_cols:
        chunk_c = max_chunk_cols                       # multiple of 128
        num_chunks = pl.cdiv(c, chunk_c)               # last chunk masked in-kernel
    else:
        chunk_c = c                                    # full-extent lane block: always legal
        num_chunks = 1

    # ---- row tiling (sublane axis) ----
    tile_rows = _choose_tile_rows(n, max_tile_rows)
    if tile_rows is None:
        # No exact divisor: full-extent block for small n, otherwise a fixed
        # multiple-of-8 tile with Pallas boundary clipping of the last row tile
        # (no jnp.pad copy of the logits; clipped rows never reach HBM).
        tile_rows = n if n <= max_tile_rows else max_tile_rows
    num_row_tiles = pl.cdiv(n, tile_rows)

    # ---- VMEM budget: double-buffered blocks + scratch, with headroom ----
    itemsize = jnp.dtype(logits.dtype).itemsize
    lane = lambda d: max(d, 128)                       # lane padding of narrow blocks
    vmem_bytes = 2 * tile_rows * lane(chunk_c) * itemsize   # logits double buffer
    vmem_bytes += 2 * 2 * tile_rows * 128 * 4               # labels + loss double buffers
    vmem_bytes += 3 * tile_rows * 128 * 4                   # online-softmax scratch
    vmem_limit = min(int(vmem_bytes * 1.5) + (8 << 20), 64 << 20)

    cost = pl.CostEstimate(
        flops=6 * n * c,
        transcendentals=n * c,
        bytes_accessed=n * c * itemsize + 2 * n * 4,
    )

    kernel = _make_mlm_kernel(chunk_c, c)

    per_row = pl.pallas_call(
        kernel,
        out_shape=jax.ShapeDtypeStruct((n, 1), jnp.float32),
        grid_spec=pltpu.PrefetchScalarGridSpec(
            num_scalar_prefetch=0,
            grid=(num_row_tiles, num_chunks),
            in_specs=[
                pl.BlockSpec((tile_rows, chunk_c), lambda i, j: (i, j)),
                pl.BlockSpec((tile_rows, 1), lambda i, j: (i, 0)),
            ],
            out_specs=pl.BlockSpec((tile_rows, 1), lambda i, j: (i, 0)),
            scratch_shapes=[
                pltpu.VMEM((tile_rows, 1), jnp.float32),   # running max
                pltpu.VMEM((tile_rows, 1), jnp.float32),   # running sum-of-exp
                pltpu.VMEM((tile_rows, 1), jnp.float32),   # running target logit
            ],
        ),
        compiler_params=pltpu.CompilerParams(
            dimension_semantics=("parallel", "arbitrary"),
            vmem_limit_bytes=vmem_limit,
        ),
        cost_estimate=cost,
    )(logits, labels2)
    return per_row


def _nsp_loss(seq_relationship_score, next_sentence_labels):
    """2-class NSP cross-entropy in plain JAX (too tiny for a kernel launch)."""
    logits = seq_relationship_score.reshape(-1, 2).astype(jnp.float32)
    labels = next_sentence_labels.reshape(-1).astype(jnp.int32)
    lse = jax.nn.logsumexp(logits, axis=-1)
    safe = jnp.where(labels == -1, 0, labels)
    tgt = jnp.take_along_axis(logits, safe[:, None], axis=-1)[:, 0]
    valid = labels != -1
    return jnp.sum(jnp.where(valid, lse - tgt, 0.0)) / jnp.sum(
        valid.astype(jnp.float32))


@functools.partial(jax.jit, static_argnames=("vocab_size", "max_tile_rows",
                                             "max_chunk_cols"))
def bert_pretraining_criterion(prediction_scores, masked_lm_labels, vocab_size,
                               seq_relationship_score=None,
                               next_sentence_labels=None,
                               max_tile_rows=256, max_chunk_cols=4096):
    """Forward pass matching torch BertPretrainingCriterion.

    Pass bf16 `prediction_scores` for real vocab sizes to halve HBM traffic;
    the kernel upcasts to f32 internally for the softmax math.
    """
    mlm_logits = prediction_scores.reshape(-1, vocab_size)
    mlm_labels = masked_lm_labels.reshape(-1).astype(jnp.int32)

    per_row = _mlm_per_row_loss(mlm_logits, mlm_labels,
                                max_tile_rows=max_tile_rows,
                                max_chunk_cols=max_chunk_cols)
    cnt = jnp.sum((mlm_labels != -1).astype(jnp.float32))
    # mean over non-ignored rows (NaN if all ignored, matching torch semantics)
    masked_lm_loss = jnp.sum(per_row) / cnt

    if seq_relationship_score is not None and next_sentence_labels is not None:
        return masked_lm_loss + _nsp_loss(seq_relationship_score,
                                          next_sentence_labels)
    return masked_lm_loss


def _reference_loss(prediction_scores, masked_lm_labels, vocab_size,
                    seq_relationship_score=None, next_sentence_labels=None):
    """Pure-JAX reference for validation."""
    def ce(logits, labels):
        logits = logits.astype(jnp.float32)
        lse = jax.nn.logsumexp(logits, axis=-1)
        safe = jnp.where(labels == -1, 0, labels)
        tgt = jnp.take_along_axis(logits, safe[:, None], axis=-1)[:, 0]
        valid = labels != -1
        return jnp.sum(jnp.where(valid, lse - tgt, 0.0)) / jnp.sum(
            valid.astype(jnp.float32))

    loss = ce(prediction_scores.reshape(-1, vocab_size),
              masked_lm_labels.reshape(-1))
    if seq_relationship_score is not None and next_sentence_labels is not None:
        loss = loss + ce(seq_relationship_score.reshape(-1, 2),
                         next_sentence_labels.reshape(-1))
    return loss


if __name__ == "__main__":
    key = jax.random.PRNGKey(0)
    k1, k2, k3, k4, k5, k6, k7 = jax.random.split(key, 7)

    # ---- Case 1: BERT-like small shapes (batch=2, seq=8, vocab=32) + NSP ----
    B, S, V = 2, 8, 32
    prediction_scores = jax.random.normal(k1, (B, S, V), dtype=jnp.float32)
    raw_labels = jax.random.randint(k2, (B, S), 0, V, dtype=jnp.int32)
    ignore_mask = jax.random.bernoulli(k3, p=0.5, shape=(B, S))
    masked_lm_labels = jnp.where(ignore_mask, -1, raw_labels).astype(jnp.int32)
    seq_relationship_score = jax.random.normal(k4, (B, 2), dtype=jnp.float32)
    next_sentence_labels = jnp.array([0, 1], dtype=jnp.int32)

    loss = bert_pretraining_criterion(
        prediction_scores, masked_lm_labels, V,
        seq_relationship_score, next_sentence_labels)
    loss = jax.block_until_ready(loss)
    ref = _reference_loss(prediction_scores, masked_lm_labels, V,
                          seq_relationship_score, next_sentence_labels)
    assert jnp.allclose(loss, ref, rtol=1e-4, atol=1e-5), (loss, ref)

    # ---- Case 2: exercise multi-chunk online softmax, ragged vocab chunk and
    #      ragged row tile (20 rows / 8-row tiles, vocab 320 / 128-lane chunks).
    B2, S2, V2 = 4, 5, 320
    pred2 = jax.random.normal(k5, (B2, S2, V2), dtype=jnp.float32)
    raw2 = jax.random.randint(k6, (B2, S2), 0, V2, dtype=jnp.int32)
    ign2 = jax.random.bernoulli(k7, p=0.3, shape=(B2, S2))
    labels2 = jnp.where(ign2, -1, raw2).astype(jnp.int32)

    loss2 = bert_pretraining_criterion(pred2, labels2, V2,
                                       max_tile_rows=8, max_chunk_cols=128)
    loss2 = jax.block_until_ready(loss2)
    ref2 = _reference_loss(pred2, labels2, V2)
    assert jnp.allclose(loss2, ref2, rtol=1e-4, atol=1e-5), (loss2, ref2)

    print("KERNEL_OK")
</pallas_src>

<mosaic_0001>
module attributes {stable_mosaic.version = 11 : i64} {
  func.func @kernel(%arg0: i32, %arg1: i32, %arg2: memref<16x32xf32, #tpu.memory_space<vmem>>, %arg3: memref<16x1xi32, #tpu.memory_space<vmem>>, %arg4: memref<16x1xf32, #tpu.memory_space<vmem>>, %arg5: memref<16x1xf32, #tpu.memory_space<vmem>>, %arg6: memref<16x1xf32, #tpu.memory_space<vmem>>, %arg7: memref<16x1xf32, #tpu.memory_space<vmem>>) attributes {dimension_semantics = [#tpu.dimension_semantics<parallel>, #tpu.dimension_semantics<arbitrary>], iteration_bounds = array<i64: 1, 1>, scalar_prefetch = 0 : i64, scratch_operands = 3 : i64, tpu.core_type = #tpu.core_type<tc>, window_params = [{transform_indices = @transform_0, window_bounds = array<i64: 16, 32>}, {transform_indices = @transform_1, window_bounds = array<i64: 16, 1>}, {transform_indices = @transform_2, window_bounds = array<i64: 16, 1>}]} {
    %c0_i32 = arith.constant 0 : i32
    %0 = arith.cmpi eq, %arg1, %c0_i32 : i32
    %1 = arith.extui %0 : i1 to i32
    %c0_i32_0 = arith.constant 0 : i32
    %2 = arith.cmpi ne, %1, %c0_i32_0 : i32
    scf.if %2 {
      %cst_23 = arith.constant 0xFF800000 : f32
      %38 = vector.broadcast %cst_23 : f32 to vector<16x1xf32>
      %c0_24 = arith.constant 0 : index
      %c0_25 = arith.constant 0 : index
      %39 = vector.load %arg5[%c0_24, %c0_25] : memref<16x1xf32, #tpu.memory_space<vmem>>, vector<16x1xf32>
      tpu.vector_store %arg5[%c0_24, %c0_25], %38 {strides = array<i32>} : memref<16x1xf32, #tpu.memory_space<vmem>>, vector<16x1xf32>,
      %cst_26 = arith.constant 0.000000e+00 : f32
      %40 = vector.broadcast %cst_26 : f32 to vector<16x1xf32>
      %c0_27 = arith.constant 0 : index
      %c0_28 = arith.constant 0 : index
      %41 = vector.load %arg6[%c0_27, %c0_28] : memref<16x1xf32, #tpu.memory_space<vmem>>, vector<16x1xf32>
      tpu.vector_store %arg6[%c0_27, %c0_28], %40 {strides = array<i32>} : memref<16x1xf32, #tpu.memory_space<vmem>>, vector<16x1xf32>,
      %cst_29 = arith.constant 0.000000e+00 : f32
      %42 = vector.broadcast %cst_29 : f32 to vector<16x1xf32>
      %c0_30 = arith.constant 0 : index
      %c0_31 = arith.constant 0 : index
      %43 = vector.load %arg7[%c0_30, %c0_31] : memref<16x1xf32, #tpu.memory_space<vmem>>, vector<16x1xf32>
      tpu.vector_store %arg7[%c0_30, %c0_31], %42 {strides = array<i32>} : memref<16x1xf32, #tpu.memory_space<vmem>>, vector<16x1xf32>,
    } else {
    }
    %c0 = arith.constant 0 : index
    %c0_1 = arith.constant 0 : index
    %3 = vector.load %arg2[%c0, %c0_1] : memref<16x32xf32, #tpu.memory_space<vmem>>, vector<16x32xf32>
    %c0_2 = arith.constant 0 : index
    %c0_3 = arith.constant 0 : index
    %4 = vector.load %arg3[%c0_2, %c0_3] : memref<16x1xi32, #tpu.memory_space<vmem>>, vector<16x1xi32>
    %c32_i32 = arith.constant 32 : i32
    %5 = arith.muli %arg1, %c32_i32 : i32
    %6 = tpu.iota {dimensions = array<i32: 1>} : vector<16x32xi32>
    %7 = vector.broadcast %5 : i32 to vector<16x32xi32>
    %8 = arith.addi %7, %6 : vector<16x32xi32>
    %c0_4 = arith.constant 0 : index
    %c0_5 = arith.constant 0 : index
    %9 = vector.load %arg7[%c0_4, %c0_5] : memref<16x1xf32, #tpu.memory_space<vmem>>, vector<16x1xf32>
    %10 = vector.broadcast %4 : vector<16x1xi32> to vector<16x32xi32>
    %11 = arith.cmpi eq, %8, %10 : vector<16x32xi32>
    %cst = arith.constant 0.000000e+00 : f32
    %12 = vector.broadcast %cst : f32 to vector<16x32xf32>
    %13 = arith.select %11, %3, %12 : vector<16x32xi1>, vector<16x32xf32>
    %cst_6 = arith.constant dense<0.000000e+00> : vector<16xf32>
    %14 = vector.multi_reduction <add>, %13, %cst_6 [1] : vector<16x32xf32> to vector<16xf32>
    %15 = vector.shape_cast %14 : vector<16xf32> to vector<16x1xf32>
    %16 = arith.addf %9, %15 : vector<16x1xf32>
    %c0_7 = arith.constant 0 : index
    %c0_8 = arith.constant 0 : index
    %17 = vector.load %arg7[%c0_7, %c0_8] : memref<16x1xf32, #tpu.memory_space<vmem>>, vector<16x1xf32>
    tpu.vector_store %arg7[%c0_7, %c0_8], %16 {strides = array<i32>} : memref<16x1xf32, #tpu.memory_space<vmem>>, vector<16x1xf32>,
    %c0_9 = arith.constant 0 : index
    %c0_10 = arith.constant 0 : index
    %18 = vector.load %arg5[%c0_9, %c0_10] : memref<16x1xf32, #tpu.memory_space<vmem>>, vector<16x1xf32>
    %cst_11 = arith.constant dense<0xFF800000> : vector<16xf32>
    %19 = vector.multi_reduction <maximumf>, %3, %cst_11 [1] : vector<16x32xf32> to vector<16xf32>
    %20 = vector.shape_cast %19 : vector<16xf32> to vector<16x1xf32>
    %21 = arith.maximumf %18, %20 : vector<16x1xf32>
    %c0_12 = arith.constant 0 : index
    %c0_13 = arith.constant 0 : index
    %22 = vector.load %arg5[%c0_12, %c0_13] : memref<16x1xf32, #tpu.memory_space<vmem>>, vector<16x1xf32>
    %23 = arith.subf %22, %21 : vector<16x1xf32>
    %24 = math.exp %23 : vector<16x1xf32>
    %c0_14 = arith.constant 0 : index
    %c0_15 = arith.constant 0 : index
    %25 = vector.load %arg6[%c0_14, %c0_15] : memref<16x1xf32, #tpu.memory_space<vmem>>, vector<16x1xf32>
    %26 = arith.mulf %24, %25 : vector<16x1xf32>
    %27 = vector.broadcast %21 : vector<16x1xf32> to vector<16x32xf32>
    %28 = arith.subf %3, %27 : vector<16x32xf32>
    %29 = math.exp %28 : vector<16x32xf32>
    %cst_16 = arith.constant dense<0.000000e+00> : vector<16xf32>
    %30 = vector.multi_reduction <add>, %29, %cst_16 [1] : vector<16x32xf32> to vector<16xf32>
    %31 = vector.shape_cast %30 : vector<16xf32> to vector<16x1xf32>
    %32 = arith.addf %26, %31 : vector<16x1xf32>
    %c0_17 = arith.constant 0 : index
    %c0_18 = arith.constant 0 : index
    %33 = vector.load %arg6[%c0_17, %c0_18] : memref<16x1xf32, #tpu.memory_space<vmem>>, vector<16x1xf32>
    tpu.vector_store %arg6[%c0_17, %c0_18], %32 {strides = array<i32>} : memref<16x1xf32, #tpu.memory_space<vmem>>, vector<16x1xf32>,
    %c0_19 = arith.constant 0 : index
    %c0_20 = arith.constant 0 : index
    %34 = vector.load %arg5[%c0_19, %c0_20] : memref<16x1xf32, #tpu.memory_space<vmem>>, vector<16x1xf32>
    tpu.vector_store %arg5[%c0_19, %c0_20], %21 {strides = array<i32>} : memref<16x1xf32, #tpu.memory_space<vmem>>, vector<16x1xf32>,
    %c0_i32_21 = arith.constant 0 : i32
    %35 = arith.cmpi eq, %arg1, %c0_i32_21 : i32
    %36 = arith.extui %35 : i1 to i32
    %c0_i32_22 = arith.constant 0 : i32
    %37 = arith.cmpi ne, %36, %c0_i32_22 : i32
    scf.if %37 {
      %c0_23 = arith.constant 0 : index
      %c0_24 = arith.constant 0 : index
      %38 = vector.load %arg5[%c0_23, %c0_24] : memref<16x1xf32, #tpu.memory_space<vmem>>, vector<16x1xf32>
      %c0_25 = arith.constant 0 : index
      %c0_26 = arith.constant 0 : index
      %39 = vector.load %arg6[%c0_25, %c0_26] : memref<16x1xf32, #tpu.memory_space<vmem>>, vector<16x1xf32>
      %40 = math.log %39 : vector<16x1xf32>
      %41 = arith.addf %38, %40 : vector<16x1xf32>
      %c-1_i32 = arith.constant -1 : i32
      %42 = vector.broadcast %c-1_i32 : i32 to vector<16x1xi32>
      %43 = arith.cmpi ne, %4, %42 : vector<16x1xi32>
      %c0_27 = arith.constant 0 : index
      %c0_28 = arith.constant 0 : index
      %44 = vector.load %arg7[%c0_27, %c0_28] : memref<16x1xf32, #tpu.memory_space<vmem>>, vector<16x1xf32>
      %45 = arith.subf %41, %44 : vector<16x1xf32>
      %cst_29 = arith.constant 0.000000e+00 : f32
      %46 = vector.broadcast %cst_29 : f32 to vector<16x1xf32>
      %47 = arith.select %43, %45, %46 : vector<16x1xi1>, vector<16x1xf32>
      %c0_30 = arith.constant 0 : index
      %c0_31 = arith.constant 0 : index
      %48 = vector.load %arg4[%c0_30, %c0_31] : memref<16x1xf32, #tpu.memory_space<vmem>>, vector<16x1xf32>
      tpu.vector_store %arg4[%c0_30, %c0_31], %47 {strides = array<i32>} : memref<16x1xf32, #tpu.memory_space<vmem>>, vector<16x1xf32>,
    } else {
    }
    return
  }
  func.func @transform_0(%arg0: i32, %arg1: i32) -> (i32, i32) {
    %c0_i32 = arith.constant 0 : i32
    return %arg0, %arg1 : i32, i32
  }
  func.func @transform_1(%arg0: i32, %arg1: i32) -> (i32, i32) {
    %c0_i32 = arith.constant 0 : i32
    %c0_i32_0 = arith.constant 0 : i32
    return %arg0, %c0_i32 : i32, i32
  }
  func.func @transform_2(%arg0: i32, %arg1: i32) -> (i32, i32) {
    %c0_i32 = arith.constant 0 : i32
    %c0_i32_0 = arith.constant 0 : i32
    return %arg0, %c0_i32 : i32, i32
  }
}

</mosaic_0001>

<bundles_post_ra>
// kernel: bert_pretraining_criterion.1
= control target key start
LH: loop header
LB: loop body
LE: loop exit
PB: predicated region body
PF: predicated region fallthrough
CT: control target
= control target key end

     0   :  { %vm43_vm0 = vcmask 261120   ;;  %vm15_vm1 = vcmask 7168   ;;  %v147_v2 = vmov -inf   ;;  %v148_v5 = vmov 0   ;;  %s211_s0 = inlined_call_operand.vmem [shape: f32[16,32], index: 0, kind: input, shape index: {}]   ;;  %s212_s1 = inlined_call_operand.vmem [shape: s32[16,1], index: 1, kind: input, shape index: {}]   ;;  %s213_s2 = inlined_call_operand.vmem [shape: f32[16,1], index: 2, kind: output, shape index: {}]  }
   0x1   :  { %v22_v0 = vld [vmem:[%s211_s0] sm:$0xff]  ;;  %v23_v1 = vld [vmem:[%s211_s0 + $0x8] sm:$0xff]  ;;  %16 = vst.msk [vmem:[#allocation2] sm:$0xff] %vm15_vm1, %v147_v2  ;;  %17 = vst.msk [vmem:[#allocation2 + $0x8] sm:$0xff] %vm15_vm1, %v147_v2  ;;  %133 = vset.pattern.permute.xlu1 %v148_v5  ;;  %134 = vset.pattern.permute.xlu0 %v148_v5  ;;  %v149_v6 = vmov 0.0   ;;  %v27_v17 = vlaneseq }
   0x2   :  { %v57_v3 = vsel %vm43_vm0, %v22_v0, -inf  ;;  %v60_v4 = vsel %vm43_vm0, %v23_v1, -inf  ;;  %18 = vst.msk [vmem:[#allocation3] sm:$0xff] %vm15_vm1, %v149_v6  ;;  %19 = vst.msk [vmem:[#allocation3 + $0x8] sm:$0xff] %vm15_vm1, %v149_v6  ;;  %v182_v7 = vld [vmem:[%s212_s1] sm:$0xff]  ;;  %v190_v16 = vld [vmem:[%s212_s1 + $0x8] sm:$0xff] }
   0x3   :  { %58 = vmax.xlane.f32.xlu0 %v57_v3  ;;  %20 = vst.msk [vmem:[#allocation4] sm:$0xff] %vm15_vm1, %v149_v6  ;;  %21 = vst.msk [vmem:[#allocation4 + $0x8] sm:$0xff] %vm15_vm1, %v149_v6  ;;  %v28_v18 = vand.u32 127, %v27_v17  ;;  %vm116_vm4 = vcmp.ne.s32.totalorder %v182_v7, 4294967295  ;;  %vm117_vm5 = vcmp.ne.s32.totalorder %v190_v16, 4294967295 }
   0x7   :  { %61 = vmax.xlane.f32.xlu0 %v60_v4 }
   0x8   :  { %v55_v8 = vld [vmem:[#allocation2] sm:$0xff]  ;;  %v56_v11 = vld [vmem:[#allocation2 + $0x8] sm:$0xff] }
   0x9   :  { %v71_v41 = vld [vmem:[#allocation3] sm:$0xff]  ;;  %v72_v45 = vld [vmem:[#allocation3 + $0x8] sm:$0xff] }
   0xa   :  { %v31_v35 = vld [vmem:[#allocation4] sm:$0xff]  ;;  %v32_v50 = vld [vmem:[#allocation4 + $0x8] sm:$0xff] }
  0x1d   :  { %34 = vperm.xlu0 %134, %v182_v7  }
  0x90   :  { %v59_v9 = vpop.xlane.xlu0 %58 }
  0x91   :  { %v63_v10 = vmax.f32 %v55_v8, %v59_v9 }
  0x93   :  { %v65_v12 = vsub.f32 %v55_v8, %v63_v10  ;;  %101 = vst.msk [vmem:[#allocation2] sm:$0xff] %vm15_vm1, %v63_v10  ;;  %77 = vperm.xlu1 %133, %v63_v10  }
  0x94   :  { %v62_v13 = vpop.xlane.xlu0 %61 }
  0x95   :  { %v64_v14 = vmax.f32 %v56_v11, %v62_v13  ;;  %v67_v38 = vmul.f32 1.442695, %v65_v12 }
  0x97   :  { %v66_v15 = vsub.f32 %v56_v11, %v64_v14  ;;  %102 = vst.msk [vmem:[#allocation2 + $0x8] sm:$0xff] %vm15_vm1, %v64_v14  ;;  %82 = vperm.xlu1 %133, %v64_v14  }
  0x99   :  { %v69_v39 = vmul.f32 1.442695, %v66_v15 }
  0x9a   :  { %v106_v57 = vld [vmem:[#allocation2] sm:$0xff] }
  0x9b   :  { %37 = vperm.xlu1 %133, %v190_v16  }
  0x9c   :  { %v35_v19 = vpop.permute.xlu0 %34 }
  0x9d   :  { %vm39_vm2 = vcmp.eq.s32.totalorder %v28_v18, %v35_v19 }
  0x9e   :  { %v41_v20 = vsel %vm39_vm2, %v22_v0, 0.0  ;;  %v107_v63 = vld [vmem:[#allocation2 + $0x8] sm:$0xff] }
  0x9f   :  { %v44_v21 = vsel %vm43_vm0, %v41_v20, 0.0 }
  0xa0   :  { %45 = vadd.xlane.f32.xlu0 %v44_v21 }
 0x112   :  { %v78_v22 = vpop.permute.xlu1 %77 }
 0x113   :  { %v85_v23 = vsub.f32 %v22_v0, %v78_v22 }
 0x115   :  { %v87_v24 = vmul.f32 1.442695, %v85_v23 }
 0x116   :  { %v83_v25 = vpop.permute.xlu1 %82 }
 0x117   :  { %135 = vpow2.f32 %v87_v24  ;;  %v86_v26 = vsub.f32 %v23_v1, %v83_v25 }
 0x119   :  { %v89_v27 = vmul.f32 1.442695, %v86_v26 }
 0x11a   :  { %v38_v29 = vpop.permute.xlu1 %37 }
 0x11b   :  { %137 = vpow2.f32 %v89_v27  ;;  %vm40_vm3 = vcmp.eq.s32.totalorder %v28_v18, %v38_v29 }
 0x11c   :  { %v42_v33 = vsel %vm40_vm3, %v23_v1, 0.0  ;;  %139 = vpow2.f32 %v67_v38 }
 0x11d   :  { %v47_v34 = vsel %vm43_vm0, %v42_v33, 0.0  ;;  %141 = vpow2.f32 %v69_v39 }
 0x121   :  { %v136_v28 = vpop.eup %135 }
 0x122   :  { %v91_v30 = vsel %vm43_vm0, %v136_v28, 0.0 }
 0x123   :  { %92 = vadd.xlane.f32.xlu1 %v91_v30 }
 0x125   :  { %v138_v31 = vpop.eup %137 }
 0x126   :  { %v94_v32 = vsel %vm43_vm0, %v138_v31, 0.0  ;;  %v140_v40 = vpop.eup %139 }
 0x127   :  { %95 = vadd.xlane.f32.xlu1 %v94_v32  ;;  %v73_v42 = vmul.f32 %v140_v40, %v71_v41  ;;  %v142_v43 = vpop.eup %141 }
 0x128   :  { %v74_v47 = vmul.f32 %v142_v43, %v72_v45 }
 0x12b   :  { %48 = vadd.xlane.f32.xlu1 %v47_v34 }
 0x12d   :  { %v46_v36 = vpop.xlane.xlu0 %45 }
 0x12e   :  { %v50_v37 = vadd.f32 %v46_v36, %v31_v35 }
 0x130   :  { %53 = vst.msk [vmem:[#allocation4] sm:$0xff] %vm15_vm1, %v50_v37 }
 0x137   :  { %v118_v58 = vld [vmem:[#allocation4] sm:$0xff] }
 0x1b0   :  { %v93_v44 = vpop.xlane.xlu1 %92 }
 0x1b1   :  { %v97_v46 = vadd.f32 %v93_v44, %v73_v42 }
 0x1b3   :  { %99 = vst.msk [vmem:[#allocation3] sm:$0xff] %vm15_vm1, %v97_v46 }
 0x1b4   :  { %v96_v48 = vpop.xlane.xlu1 %95 }
 0x1b5   :  { %v98_v49 = vadd.f32 %v96_v48, %v74_v47 }
 0x1b7   :  { %100 = vst.msk [vmem:[#allocation3 + $0x8] sm:$0xff] %vm15_vm1, %v98_v49 }
 0x1b8   :  { %v49_v51 = vpop.xlane.xlu1 %48 }
 0x1b9   :  { %v51_v52 = vadd.f32 %v49_v51, %v32_v50 }
 0x1ba   :  { %v108_v53 = vld [vmem:[#allocation3] sm:$0xff] }
 0x1bb   :  { %143 = vlog2.f32 %v108_v53  ;;  %54 = vst.msk [vmem:[#allocation4 + $0x8] sm:$0xff] %vm15_vm1, %v51_v52 }
 0x1be   :  { %v109_v54 = vld [vmem:[#allocation3 + $0x8] sm:$0xff] }
 0x1bf   :  { %145 = vlog2.f32 %v109_v54 }
 0x1c2   :  { %v119_v2 = vld [vmem:[#allocation4 + $0x8] sm:$0xff] }
 0x1c5   :  { %v144_v55 = vpop.eup %143 }
 0x1c6   :  { %v111_v56 = vmul.f32 0.6931472, %v144_v55 }
 0x1c8   :  { %v114_v59 = vadd.f32 %v111_v56, %v106_v57 }
 0x1c9   :  { %v146_v60 = vpop.eup %145 }
 0x1ca   :  { %v113_v61 = vmul.f32 0.6931472, %v146_v60  ;;  %v120_v62 = vsub.f32 %v114_v59, %v118_v58 }
 0x1cc   :  { %v115_v0 = vadd.f32 %v113_v61, %v107_v63  ;;  %v122_v1 = vsel %vm116_vm4, %v120_v62, 0.0 }
 0x1cd   :  { %124 = vst.msk [vmem:[%s213_s2] sm:$0xff] %vm15_vm1, %v122_v1 }
 0x1ce   :  { %v121_v3 = vsub.f32 %v115_v0, %v119_v2 }
 0x1d0   :  { %v123_v4 = vsel %vm117_vm5, %v121_v3, 0.0 }
 0x1d1   :  { %125 = vst.msk [vmem:[%s213_s2 + $0x8] sm:$0xff] %vm15_vm1, %v123_v4 }

</bundles_post_ra>
